<compile_context>
chip_gen: v7x
topology: tpu7x:2x2x1
jax: 0.10.0
libtpu: 0.0.40
codegen_flags: <defaults>
</compile_context>

<pallas_src>
import jax
import jax.numpy as jnp
from jax.experimental import pallas as pl
from jax.experimental.pallas import tpu as pltpu

EPS = 1e-5  # nn.BatchNorm2d default eps


def conv_norm_acti(x_nchw, w_kkio, bias, gamma, beta, *,
                   rows_per_step=256, force_two_pass=False):
    """ConvNormActi forward (conv + training-mode BatchNorm + ReLU).

    x_nchw: (N, C_in, H, W) f32; w_kkio: (K, K, C_in, C_out) f32;
    bias/gamma/beta: (C_out,) f32.  Returns (N, C_out, H, W) f32.
    """
    n, c_in, h, w = x_nchw.shape
    k = w_kkio.shape[0]
    c_out = w_kkio.shape[-1]
    p = k // 2                              # same padding, stride 1, odd kernel
    hp, wp = h + 2 * p, w + 2 * p
    wpc = wp * c_in                         # input lane width  (w_pad, c_in)
    wco = w * c_out                         # output lane width (w, c_out)

    # Images per grid step: pack enough whole images to reach ~rows_per_step
    # output rows per tile (amortizes grid/DMA overhead, no halo needed since
    # padding is per-image).
    want = min(n, max(1, rows_per_step // max(h, 1)))
    tb = max(d for d in range(1, want + 1) if n % d == 0)
    nb = n // tb
    inv_count = 1.0 / float(n * h * w)

    # ---- layout plumbing (XLA side, bf16) ---------------------------------
    x_nhwc = jnp.transpose(x_nchw, (0, 2, 3, 1))
    xp = jnp.pad(x_nhwc, ((0, 0), (p, p), (p, p), (0, 0))).astype(jnp.bfloat16)
    x3 = xp.reshape(n, hp, wpc)             # rows=(n, h_pad), lanes=(w_pad, c_in)

    # Banded ("Toeplitz") conv weight, one (Wp*C_in, W*C_out) slab per kh tap,
    # built with a single einsum against a 0/1 band selector (no K*W scatters).
    kw_i = jnp.arange(k)[:, None, None]
    wi_i = jnp.arange(w)[None, :, None]
    v_i = jnp.arange(wp)[None, None, :]
    sel = (v_i == wi_i + kw_i).astype(jnp.float32)            # (K, W, Wp)
    bw = jnp.einsum('xwv,hxio->hviwo', sel, w_kkio)           # (K, Wp, Cin, W, Cout)
    bw = bw.reshape(k, wpc, wco).astype(jnp.bfloat16)

    # Conv bias intentionally unused: training-mode BatchNorm subtracts the
    # batch mean, which cancels a per-channel bias exactly.
    del bias

    gamma_l = jnp.tile(gamma.astype(jnp.float32), w).reshape(1, wco)
    beta_l = jnp.tile(beta.astype(jnp.float32), w).reshape(1, wco)

    # ---- shared in-kernel pieces -------------------------------------------
    def conv_image(x_ref, w_ref, b):
        """Conv of image b of the tile as K row-shifted MXU matmuls -> f32."""
        x = x_ref[b]                                          # (Hp, Wp*C_in) bf16
        acc = jnp.dot(x[0:h], w_ref[0], preferred_element_type=jnp.float32)
        for kh in range(1, k):
            acc = acc + jnp.dot(x[kh:kh + h], w_ref[kh],
                                preferred_element_type=jnp.float32)
        return acc                                            # (H, W*C_out) f32

    def fold_lanes(v):
        """Exact per-channel fold of a (1, W*C_out) lane vector: lane p ends up
        holding the sum over all lanes q with q % C_out == p % C_out."""
        out = v
        for j in range(1, w):
            out = out + pltpu.roll(v, shift=j * c_out, axis=1)
        return out

    # ---- VMEM budgeting / path selection -----------------------------------
    in_tile = tb * hp * wpc * 2
    w_bytes = k * wpc * wco * 2
    out_tile = tb * h * wco * 4
    slab = n * h * wco * 4                  # full conv output held in VMEM (fused)
    pipeline = 2 * (in_tile + w_bytes + out_tile)
    use_fused = (not force_two_pass) and (slab + pipeline < 16 * 2 ** 20)
    est = pipeline + (slab if use_fused else 0)
    # Valid on v5e/v6e (128 MiB) and v7x (64 MiB) alike.
    vmem_limit = int(min(64 * 2 ** 20, max(32 * 2 ** 20, 2 * est)))

    if use_fused:
        # ---- single fused call: phase 0 = conv + stats, phase 1 = BN + ReLU -
        def fused_kernel(x_ref, w_ref, gam_ref, bet_ref, o_ref,
                         conv_sc, sum_sc, ssq_sc):
            ph = pl.program_id(0)
            i = pl.program_id(1)

            @pl.when(ph == 0)
            def _():
                @pl.when(i == 0)
                def _():
                    sum_sc[...] = jnp.zeros_like(sum_sc)
                    ssq_sc[...] = jnp.zeros_like(ssq_sc)

                for b in range(tb):
                    conv = conv_image(x_ref, w_ref, b)        # (H, wco) f32
                    conv_sc[i * tb + b] = conv
                    sum_sc[...] += jnp.sum(conv, axis=0, keepdims=True)
                    ssq_sc[...] += jnp.sum(conv * conv, axis=0, keepdims=True)

            @pl.when(ph == 1)
            def _():
                mean = fold_lanes(sum_sc[...]) * inv_count
                var = jnp.maximum(
                    fold_lanes(ssq_sc[...]) * inv_count - mean * mean, 0.0)
                scale = gam_ref[...] * jax.lax.rsqrt(var + EPS)
                shift = bet_ref[...] - mean * scale
                for b in range(tb):
                    y = conv_sc[i * tb + b] * scale + shift
                    o_ref[b * h:(b + 1) * h, :] = (
                        jnp.maximum(y, 0.0).astype(o_ref.dtype))

        out2d = pl.pallas_call(
            fused_kernel,
            out_shape=jax.ShapeDtypeStruct((n * h, wco), jnp.float32),
            grid=(2, nb),
            in_specs=[
                # phase 1 never needs fresh input: pin the index to block 0
                pl.BlockSpec((tb, hp, wpc), lambda ph, i: (i * (1 - ph), 0, 0)),
                pl.BlockSpec((k, wpc, wco), lambda ph, i: (0, 0, 0)),
                pl.BlockSpec((1, wco), lambda ph, i: (0, 0)),
                pl.BlockSpec((1, wco), lambda ph, i: (0, 0)),
            ],
            # phase 0 stays on output block 0 (never written); phase 1 walks
            # the blocks, so every block is written in consecutive steps only.
            out_specs=pl.BlockSpec((tb * h, wco), lambda ph, i: (ph * i, 0)),
            scratch_shapes=[
                pltpu.VMEM((n, h, wco), jnp.float32),   # conv slab, written once
                pltpu.VMEM((1, wco), jnp.float32),      # per-lane sum
                pltpu.VMEM((1, wco), jnp.float32),      # per-lane sum of squares
            ],
            compiler_params=pltpu.CompilerParams(
                dimension_semantics=("arbitrary", "arbitrary"),
                vmem_limit_bytes=vmem_limit),
        )(x3, bw, gamma_l, beta_l)
    else:
        # ---- streaming fallback: pass 1 stats, pass 2 recompute + normalize -
        def stats_kernel(x_ref, w_ref, sum_ref, ssq_ref):
            @pl.when(pl.program_id(0) == 0)
            def _():
                sum_ref[...] = jnp.zeros_like(sum_ref)
                ssq_ref[...] = jnp.zeros_like(ssq_ref)

            for b in range(tb):
                conv = conv_image(x_ref, w_ref, b)
                sum_ref[...] += jnp.sum(conv, axis=0, keepdims=True)
                ssq_ref[...] += jnp.sum(conv * conv, axis=0, keepdims=True)

        def apply_kernel(x_ref, w_ref, scale_ref, shift_ref, o_ref):
            for b in range(tb):
                conv = conv_image(x_ref, w_ref, b)
                y = conv * scale_ref[...] + shift_ref[...]
                o_ref[b * h:(b + 1) * h, :] = (
                    jnp.maximum(y, 0.0).astype(o_ref.dtype))

        sums, ssqs = pl.pallas_call(
            stats_kernel,
            out_shape=(jax.ShapeDtypeStruct((1, wco), jnp.float32),
                       jax.ShapeDtypeStruct((1, wco), jnp.float32)),
            grid=(nb,),
            in_specs=[pl.BlockSpec((tb, hp, wpc), lambda i: (i, 0, 0)),
                      pl.BlockSpec((k, wpc, wco), lambda i: (0, 0, 0))],
            out_specs=[pl.BlockSpec((1, wco), lambda i: (0, 0)),
                       pl.BlockSpec((1, wco), lambda i: (0, 0))],
            compiler_params=pltpu.CompilerParams(
                dimension_semantics=("arbitrary",),
                vmem_limit_bytes=vmem_limit),
        )(x3, bw)

        # Fold per-(w, c_out) lanes to per-channel and finalize BN scale/shift
        # (O(C_out) work, plain JAX, all f32).
        s = jnp.sum(sums.reshape(w, c_out), axis=0)
        ss = jnp.sum(ssqs.reshape(w, c_out), axis=0)
        mean_c = s * inv_count
        var_c = jnp.maximum(ss * inv_count - mean_c * mean_c, 0.0)
        scale_c = gamma * jax.lax.rsqrt(var_c + EPS)
        shift_c = beta - mean_c * scale_c
        scale_l = jnp.tile(scale_c, w).reshape(1, wco)
        shift_l = jnp.tile(shift_c, w).reshape(1, wco)

        out2d = pl.pallas_call(
            apply_kernel,
            out_shape=jax.ShapeDtypeStruct((n * h, wco), jnp.float32),
            grid=(nb,),
            in_specs=[pl.BlockSpec((tb, hp, wpc), lambda i: (i, 0, 0)),
                      pl.BlockSpec((k, wpc, wco), lambda i: (0, 0, 0)),
                      pl.BlockSpec((1, wco), lambda i: (0, 0)),
                      pl.BlockSpec((1, wco), lambda i: (0, 0))],
            out_specs=pl.BlockSpec((tb * h, wco), lambda i: (i, 0)),
            compiler_params=pltpu.CompilerParams(
                dimension_semantics=("parallel",),
                vmem_limit_bytes=vmem_limit),
        )(x3, bw, scale_l, shift_l)

    out = out2d.reshape(n, h, w, c_out)
    return jnp.transpose(out, (0, 3, 1, 2))                   # back to NCHW


if __name__ == "__main__":
    key = jax.random.PRNGKey(0)
    k_x, k_w, k_b, k_g, k_be = jax.random.split(key, 5)

    # ConvNormActi(spatial_dims=2, in_channels=4, out_channels=8,
    #              kernel_size=3, norm_type="batch", acti_type="relu",
    #              dropout_prob=None)
    N, C_IN, H, W = 2, 4, 16, 16
    C_OUT, K = 8, 3

    x = jax.random.normal(k_x, (N, C_IN, H, W), jnp.float32)
    # Conv weight stored (K, K, C_in, C_out)  (PyTorch layout is (C_out, C_in, K, K)).
    w = 0.1 * jax.random.normal(k_w, (K, K, C_IN, C_OUT), jnp.float32)
    b = 0.1 * jax.random.normal(k_b, (C_OUT,), jnp.float32)
    gamma = 1.0 + 0.1 * jax.random.normal(k_g, (C_OUT,), jnp.float32)
    beta = 0.1 * jax.random.normal(k_be, (C_OUT,), jnp.float32)

    # Plain-JAX reference.  Conv inputs are rounded to bf16 exactly as the
    # kernel feeds the MXU (accumulation stays f32); bias is kept here to show
    # BN cancels it; BN/ReLU in f32.
    x_q = x.astype(jnp.bfloat16).astype(jnp.float32)
    w_q = w.astype(jnp.bfloat16).astype(jnp.float32)
    ref_conv = jax.lax.conv_general_dilated(
        x_q, jnp.transpose(w_q, (3, 2, 0, 1)),                # OIHW
        window_strides=(1, 1), padding="SAME",
        dimension_numbers=("NCHW", "OIHW", "NCHW"),
    ) + b[None, :, None, None]
    m = jnp.mean(ref_conv, axis=(0, 2, 3), keepdims=True)
    v = jnp.mean((ref_conv - m) ** 2, axis=(0, 2, 3), keepdims=True)
    ref = jnp.maximum(
        (ref_conv - m) * jax.lax.rsqrt(v + EPS)
        * gamma[None, :, None, None] + beta[None, :, None, None],
        0.0,
    )

    # Fused single-call path (default): both images in one grid step.
    out_fused = jax.block_until_ready(conv_norm_acti(x, w, b, gamma, beta))
    # Fused path with a multi-step grid (1 image per step) to exercise tiling.
    out_fused_t = jax.block_until_ready(
        conv_norm_acti(x, w, b, gamma, beta, rows_per_step=8))
    # Streaming two-pass fallback path (forced).
    out_stream = jax.block_until_ready(
        conv_norm_acti(x, w, b, gamma, beta, rows_per_step=8,
                       force_two_pass=True))

    for out in (out_fused, out_fused_t, out_stream):
        err = float(jnp.max(jnp.abs(out - ref)))
        assert jnp.allclose(out, ref, atol=2e-3, rtol=2e-3), err

    print("KERNEL_OK")
</pallas_src>

<mosaic_0001>
module attributes {stable_mosaic.version = 11 : i64} {
  func.func @fused_kernel(%arg0: i32, %arg1: i32, %arg2: memref<2x18x72xbf16, #tpu.memory_space<vmem>>, %arg3: memref<3x72x128xbf16, #tpu.memory_space<vmem>>, %arg4: memref<1x128xf32, #tpu.memory_space<vmem>>, %arg5: memref<1x128xf32, #tpu.memory_space<vmem>>, %arg6: memref<32x128xf32, #tpu.memory_space<vmem>>, %arg7: memref<2x16x128xf32, #tpu.memory_space<vmem>>, %arg8: memref<1x128xf32, #tpu.memory_space<vmem>>, %arg9: memref<1x128xf32, #tpu.memory_space<vmem>>) attributes {dimension_semantics = [#tpu.dimension_semantics<arbitrary>, #tpu.dimension_semantics<arbitrary>], iteration_bounds = array<i64: 2, 1>, scalar_prefetch = 0 : i64, scratch_operands = 3 : i64, tpu.core_type = #tpu.core_type<tc>, window_params = [{transform_indices = @transform_0, window_bounds = array<i64: 2, 18, 72>}, {pipeline_mode = #tpu.pipeline_mode<synchronous>, transform_indices = @transform_1, window_bounds = array<i64: 3, 72, 128>}, {pipeline_mode = #tpu.pipeline_mode<synchronous>, transform_indices = @transform_2, window_bounds = array<i64: 1, 128>}, {pipeline_mode = #tpu.pipeline_mode<synchronous>, transform_indices = @transform_3, window_bounds = array<i64: 1, 128>}, {transform_indices = @transform_4, window_bounds = array<i64: 32, 128>}]} {
    %c0_i32 = arith.constant 0 : i32
    %0 = arith.cmpi eq, %arg0, %c0_i32 : i32
    %1 = arith.extui %0 : i1 to i32
    %c0_i32_0 = arith.constant 0 : i32
    %2 = arith.cmpi ne, %1, %c0_i32_0 : i32
    scf.if %2 {
      %c0_i32_2 = arith.constant 0 : i32
      %6 = arith.cmpi eq, %arg1, %c0_i32_2 : i32
      %7 = arith.extui %6 : i1 to i32
      %c0_i32_3 = arith.constant 0 : i32
      %8 = arith.cmpi ne, %7, %c0_i32_3 : i32
      scf.if %8 {
        %cst_57 = arith.constant 0.000000e+00 : f32
        %75 = vector.broadcast %cst_57 : f32 to vector<1x128xf32>
        %c0_58 = arith.constant 0 : index
        %c0_59 = arith.constant 0 : index
        %76 = vector.load %arg8[%c0_58, %c0_59] : memref<1x128xf32, #tpu.memory_space<vmem>>, vector<1x128xf32>
        tpu.vector_store %arg8[%c0_58, %c0_59], %75 {strides = array<i32>} : memref<1x128xf32, #tpu.memory_space<vmem>>, vector<1x128xf32>,
        %cst_60 = arith.constant 0.000000e+00 : f32
        %77 = vector.broadcast %cst_60 : f32 to vector<1x128xf32>
        %c0_61 = arith.constant 0 : index
        %c0_62 = arith.constant 0 : index
        %78 = vector.load %arg9[%c0_61, %c0_62] : memref<1x128xf32, #tpu.memory_space<vmem>>, vector<1x128xf32>
        tpu.vector_store %arg9[%c0_61, %c0_62], %77 {strides = array<i32>} : memref<1x128xf32, #tpu.memory_space<vmem>>, vector<1x128xf32>,
      } else {
      }
      %c0 = arith.constant 0 : index
      %c0_4 = arith.constant 0 : index
      %c0_5 = arith.constant 0 : index
      %9 = vector.load %arg2[%c0, %c0_4, %c0_5] : memref<2x18x72xbf16, #tpu.memory_space<vmem>>, vector<1x18x72xbf16>
      %10 = vector.shape_cast %9 : vector<1x18x72xbf16> to vector<18x72xbf16>
      %11 = vector.extract_strided_slice %10 {offsets = [0, 0], sizes = [16, 72], strides = [1, 1]} : vector<18x72xbf16> to vector<16x72xbf16>
      %c0_6 = arith.constant 0 : index
      %c0_7 = arith.constant 0 : index
      %c0_8 = arith.constant 0 : index
      %12 = vector.load %arg3[%c0_6, %c0_7, %c0_8] : memref<3x72x128xbf16, #tpu.memory_space<vmem>>, vector<1x72x128xbf16>
      %13 = vector.shape_cast %12 : vector<1x72x128xbf16> to vector<72x128xbf16>
      %cst = arith.constant dense<0.000000e+00> : vector<16x128xf32>
      %14 = tpu.matmul %11, %13, %cst {dimension_numbers = #tpu.dot_dimension_numbers<[1], [0], [0], [1], [0, 0, 1, 1], [], []>} : vector<16x72xbf16>, vector<72x128xbf16>, vector<16x128xf32> -> vector<16x128xf32>
      %15 = vector.extract_strided_slice %10 {offsets = [1, 0], sizes = [16, 72], strides = [1, 1]} : vector<18x72xbf16> to vector<16x72xbf16>
      %c1 = arith.constant 1 : index
      %c0_9 = arith.constant 0 : index
      %c0_10 = arith.constant 0 : index
      %16 = vector.load %arg3[%c1, %c0_9, %c0_10] : memref<3x72x128xbf16, #tpu.memory_space<vmem>>, vector<1x72x128xbf16>
      %17 = vector.shape_cast %16 : vector<1x72x128xbf16> to vector<72x128xbf16>
      %cst_11 = arith.constant dense<0.000000e+00> : vector<16x128xf32>
      %18 = tpu.matmul %15, %17, %cst_11 {dimension_numbers = #tpu.dot_dimension_numbers<[1], [0], [0], [1], [0, 0, 1, 1], [], []>} : vector<16x72xbf16>, vector<72x128xbf16>, vector<16x128xf32> -> vector<16x128xf32>
      %19 = arith.addf %14, %18 : vector<16x128xf32>
      %20 = vector.extract_strided_slice %10 {offsets = [2, 0], sizes = [16, 72], strides = [1, 1]} : vector<18x72xbf16> to vector<16x72xbf16>
      %c2 = arith.constant 2 : index
      %c0_12 = arith.constant 0 : index
      %c0_13 = arith.constant 0 : index
      %21 = vector.load %arg3[%c2, %c0_12, %c0_13] : memref<3x72x128xbf16, #tpu.memory_space<vmem>>, vector<1x72x128xbf16>
      %22 = vector.shape_cast %21 : vector<1x72x128xbf16> to vector<72x128xbf16>
      %cst_14 = arith.constant dense<0.000000e+00> : vector<16x128xf32>
      %23 = tpu.matmul %20, %22, %cst_14 {dimension_numbers = #tpu.dot_dimension_numbers<[1], [0], [0], [1], [0, 0, 1, 1], [], []>} : vector<16x72xbf16>, vector<72x128xbf16>, vector<16x128xf32> -> vector<16x128xf32>
      %24 = arith.addf %19, %23 : vector<16x128xf32>
      %c2_i32 = arith.constant 2 : i32
      %25 = arith.muli %arg1, %c2_i32 : i32
      %c0_i32_15 = arith.constant 0 : i32
      %26 = arith.addi %25, %c0_i32_15 : i32
      %27 = arith.index_cast %26 : i32 to index
      %c0_16 = arith.constant 0 : index
      %c0_17 = arith.constant 0 : index
      %28 = vector.load %arg7[%27, %c0_16, %c0_17] : memref<2x16x128xf32, #tpu.memory_space<vmem>>, vector<1x16x128xf32>
      %29 = vector.shape_cast %28 : vector<1x16x128xf32> to vector<16x128xf32>
      %30 = vector.shape_cast %24 : vector<16x128xf32> to vector<1x16x128xf32>
      tpu.vector_store %arg7[%27, %c0_16, %c0_17], %30 {strides = array<i32>} : memref<2x16x128xf32, #tpu.memory_space<vmem>>, vector<1x16x128xf32>,
      %c0_18 = arith.constant 0 : index
      %c0_19 = arith.constant 0 : index
      %31 = vector.load %arg8[%c0_18, %c0_19] : memref<1x128xf32, #tpu.memory_space<vmem>>, vector<1x128xf32>
      %cst_20 = arith.constant dense<0.000000e+00> : vector<128xf32>
      %32 = vector.multi_reduction <add>, %24, %cst_20 [0] : vector<16x128xf32> to vector<128xf32>
      %33 = vector.shape_cast %32 : vector<128xf32> to vector<1x128xf32>
      %34 = arith.addf %31, %33 : vector<1x128xf32>
      %c0_21 = arith.constant 0 : index
      %c0_22 = arith.constant 0 : index
      %35 = vector.load %arg8[%c0_21, %c0_22] : memref<1x128xf32, #tpu.memory_space<vmem>>, vector<1x128xf32>
      tpu.vector_store %arg8[%c0_21, %c0_22], %34 {strides = array<i32>} : memref<1x128xf32, #tpu.memory_space<vmem>>, vector<1x128xf32>,
      %c0_23 = arith.constant 0 : index
      %c0_24 = arith.constant 0 : index
      %36 = vector.load %arg9[%c0_23, %c0_24] : memref<1x128xf32, #tpu.memory_space<vmem>>, vector<1x128xf32>
      %37 = arith.mulf %24, %24 : vector<16x128xf32>
      %cst_25 = arith.constant dense<0.000000e+00> : vector<128xf32>
      %38 = vector.multi_reduction <add>, %37, %cst_25 [0] : vector<16x128xf32> to vector<128xf32>
      %39 = vector.shape_cast %38 : vector<128xf32> to vector<1x128xf32>
      %40 = arith.addf %36, %39 : vector<1x128xf32>
      %c0_26 = arith.constant 0 : index
      %c0_27 = arith.constant 0 : index
      %41 = vector.load %arg9[%c0_26, %c0_27] : memref<1x128xf32, #tpu.memory_space<vmem>>, vector<1x128xf32>
      tpu.vector_store %arg9[%c0_26, %c0_27], %40 {strides = array<i32>} : memref<1x128xf32, #tpu.memory_space<vmem>>, vector<1x128xf32>,
      %c1_28 = arith.constant 1 : index
      %c0_29 = arith.constant 0 : index
      %c0_30 = arith.constant 0 : index
      %42 = vector.load %arg2[%c1_28, %c0_29, %c0_30] : memref<2x18x72xbf16, #tpu.memory_space<vmem>>, vector<1x18x72xbf16>
      %43 = vector.shape_cast %42 : vector<1x18x72xbf16> to vector<18x72xbf16>
      %44 = vector.extract_strided_slice %43 {offsets = [0, 0], sizes = [16, 72], strides = [1, 1]} : vector<18x72xbf16> to vector<16x72xbf16>
      %c0_31 = arith.constant 0 : index
      %c0_32 = arith.constant 0 : index
      %c0_33 = arith.constant 0 : index
      %45 = vector.load %arg3[%c0_31, %c0_32, %c0_33] : memref<3x72x128xbf16, #tpu.memory_space<vmem>>, vector<1x72x128xbf16>
      %46 = vector.shape_cast %45 : vector<1x72x128xbf16> to vector<72x128xbf16>
      %cst_34 = arith.constant dense<0.000000e+00> : vector<16x128xf32>
      %47 = tpu.matmul %44, %46, %cst_34 {dimension_numbers = #tpu.dot_dimension_numbers<[1], [0], [0], [1], [0, 0, 1, 1], [], []>} : vector<16x72xbf16>, vector<72x128xbf16>, vector<16x128xf32> -> vector<16x128xf32>
      %48 = vector.extract_strided_slice %43 {offsets = [1, 0], sizes = [16, 72], strides = [1, 1]} : vector<18x72xbf16> to vector<16x72xbf16>
      %c1_35 = arith.constant 1 : index
      %c0_36 = arith.constant 0 : index
      %c0_37 = arith.constant 0 : index
      %49 = vector.load %arg3[%c1_35, %c0_36, %c0_37] : memref<3x72x128xbf16, #tpu.memory_space<vmem>>, vector<1x72x128xbf16>
      %50 = vector.shape_cast %49 : vector<1x72x128xbf16> to vector<72x128xbf16>
      %cst_38 = arith.constant dense<0.000000e+00> : vector<16x128xf32>
      %51 = tpu.matmul %48, %50, %cst_38 {dimension_numbers = #tpu.dot_dimension_numbers<[1], [0], [0], [1], [0, 0, 1, 1], [], []>} : vector<16x72xbf16>, vector<72x128xbf16>, vector<16x128xf32> -> vector<16x128xf32>
      %52 = arith.addf %47, %51 : vector<16x128xf32>
      %53 = vector.extract_strided_slice %43 {offsets = [2, 0], sizes = [16, 72], strides = [1, 1]} : vector<18x72xbf16> to vector<16x72xbf16>
      %c2_39 = arith.constant 2 : index
      %c0_40 = arith.constant 0 : index
      %c0_41 = arith.constant 0 : index
      %54 = vector.load %arg3[%c2_39, %c0_40, %c0_41] : memref<3x72x128xbf16, #tpu.memory_space<vmem>>, vector<1x72x128xbf16>
      %55 = vector.shape_cast %54 : vector<1x72x128xbf16> to vector<72x128xbf16>
      %cst_42 = arith.constant dense<0.000000e+00> : vector<16x128xf32>
      %56 = tpu.matmul %53, %55, %cst_42 {dimension_numbers = #tpu.dot_dimension_numbers<[1], [0], [0], [1], [0, 0, 1, 1], [], []>} : vector<16x72xbf16>, vector<72x128xbf16>, vector<16x128xf32> -> vector<16x128xf32>
      %57 = arith.addf %52, %56 : vector<16x128xf32>
      %c2_i32_43 = arith.constant 2 : i32
      %58 = arith.muli %arg1, %c2_i32_43 : i32
      %c1_i32_44 = arith.constant 1 : i32
      %59 = arith.addi %58, %c1_i32_44 : i32
      %60 = arith.index_cast %59 : i32 to index
      %c0_45 = arith.constant 0 : index
      %c0_46 = arith.constant 0 : index
      %61 = vector.load %arg7[%60, %c0_45, %c0_46] : memref<2x16x128xf32, #tpu.memory_space<vmem>>, vector<1x16x128xf32>
      %62 = vector.shape_cast %61 : vector<1x16x128xf32> to vector<16x128xf32>
      %63 = vector.shape_cast %57 : vector<16x128xf32> to vector<1x16x128xf32>
      tpu.vector_store %arg7[%60, %c0_45, %c0_46], %63 {strides = array<i32>} : memref<2x16x128xf32, #tpu.memory_space<vmem>>, vector<1x16x128xf32>,
      %c0_47 = arith.constant 0 : index
      %c0_48 = arith.constant 0 : index
      %64 = vector.load %arg8[%c0_47, %c0_48] : memref<1x128xf32, #tpu.memory_space<vmem>>, vector<1x128xf32>
      %cst_49 = arith.constant dense<0.000000e+00> : vector<128xf32>
      %65 = vector.multi_reduction <add>, %57, %cst_49 [0] : vector<16x128xf32> to vector<128xf32>
      %66 = vector.shape_cast %65 : vector<128xf32> to vector<1x128xf32>
      %67 = arith.addf %64, %66 : vector<1x128xf32>
      %c0_50 = arith.constant 0 : index
      %c0_51 = arith.constant 0 : index
      %68 = vector.load %arg8[%c0_50, %c0_51] : memref<1x128xf32, #tpu.memory_space<vmem>>, vector<1x128xf32>
      tpu.vector_store %arg8[%c0_50, %c0_51], %67 {strides = array<i32>} : memref<1x128xf32, #tpu.memory_space<vmem>>, vector<1x128xf32>,
      %c0_52 = arith.constant 0 : index
      %c0_53 = arith.constant 0 : index
      %69 = vector.load %arg9[%c0_52, %c0_53] : memref<1x128xf32, #tpu.memory_space<vmem>>, vector<1x128xf32>
      %70 = arith.mulf %57, %57 : vector<16x128xf32>
      %cst_54 = arith.constant dense<0.000000e+00> : vector<128xf32>
      %71 = vector.multi_reduction <add>, %70, %cst_54 [0] : vector<16x128xf32> to vector<128xf32>
      %72 = vector.shape_cast %71 : vector<128xf32> to vector<1x128xf32>
      %73 = arith.addf %69, %72 : vector<1x128xf32>
      %c0_55 = arith.constant 0 : index
      %c0_56 = arith.constant 0 : index
      %74 = vector.load %arg9[%c0_55, %c0_56] : memref<1x128xf32, #tpu.memory_space<vmem>>, vector<1x128xf32>
      tpu.vector_store %arg9[%c0_55, %c0_56], %73 {strides = array<i32>} : memref<1x128xf32, #tpu.memory_space<vmem>>, vector<1x128xf32>,
    } else {
    }
    %c1_i32 = arith.constant 1 : i32
    %3 = arith.cmpi eq, %arg0, %c1_i32 : i32
    %4 = arith.extui %3 : i1 to i32
    %c0_i32_1 = arith.constant 0 : i32
    %5 = arith.cmpi ne, %4, %c0_i32_1 : i32
    scf.if %5 {
      %c0 = arith.constant 0 : index
      %c0_2 = arith.constant 0 : index
      %6 = vector.load %arg8[%c0, %c0_2] : memref<1x128xf32, #tpu.memory_space<vmem>>, vector<1x128xf32>
      %c8_i32 = arith.constant 8 : i32
      %7 = tpu.dynamic_rotate %6 by %c8_i32 dim 1 : vector<1x128xf32>, i32 -> vector<1x128xf32>
      %8 = arith.addf %6, %7 : vector<1x128xf32>
      %c16_i32 = arith.constant 16 : i32
      %9 = tpu.dynamic_rotate %6 by %c16_i32 dim 1 : vector<1x128xf32>, i32 -> vector<1x128xf32>
      %10 = arith.addf %8, %9 : vector<1x128xf32>
      %c24_i32 = arith.constant 24 : i32
      %11 = tpu.dynamic_rotate %6 by %c24_i32 dim 1 : vector<1x128xf32>, i32 -> vector<1x128xf32>
      %12 = arith.addf %10, %11 : vector<1x128xf32>
      %c32_i32 = arith.constant 32 : i32
      %13 = tpu.dynamic_rotate %6 by %c32_i32 dim 1 : vector<1x128xf32>, i32 -> vector<1x128xf32>
      %14 = arith.addf %12, %13 : vector<1x128xf32>
      %c40_i32 = arith.constant 40 : i32
      %15 = tpu.dynamic_rotate %6 by %c40_i32 dim 1 : vector<1x128xf32>, i32 -> vector<1x128xf32>
      %16 = arith.addf %14, %15 : vector<1x128xf32>
      %c48_i32 = arith.constant 48 : i32
      %17 = tpu.dynamic_rotate %6 by %c48_i32 dim 1 : vector<1x128xf32>, i32 -> vector<1x128xf32>
      %18 = arith.addf %16, %17 : vector<1x128xf32>
      %c56_i32 = arith.constant 56 : i32
      %19 = tpu.dynamic_rotate %6 by %c56_i32 dim 1 : vector<1x128xf32>, i32 -> vector<1x128xf32>
      %20 = arith.addf %18, %19 : vector<1x128xf32>
      %c64_i32 = arith.constant 64 : i32
      %21 = tpu.dynamic_rotate %6 by %c64_i32 dim 1 : vector<1x128xf32>, i32 -> vector<1x128xf32>
      %22 = arith.addf %20, %21 : vector<1x128xf32>
      %c72_i32 = arith.constant 72 : i32
      %23 = tpu.dynamic_rotate %6 by %c72_i32 dim 1 : vector<1x128xf32>, i32 -> vector<1x128xf32>
      %24 = arith.addf %22, %23 : vector<1x128xf32>
      %c80_i32 = arith.constant 80 : i32
      %25 = tpu.dynamic_rotate %6 by %c80_i32 dim 1 : vector<1x128xf32>, i32 -> vector<1x128xf32>
      %26 = arith.addf %24, %25 : vector<1x128xf32>
      %c88_i32 = arith.constant 88 : i32
      %27 = tpu.dynamic_rotate %6 by %c88_i32 dim 1 : vector<1x128xf32>, i32 -> vector<1x128xf32>
      %28 = arith.addf %26, %27 : vector<1x128xf32>
      %c96_i32 = arith.constant 96 : i32
      %29 = tpu.dynamic_rotate %6 by %c96_i32 dim 1 : vector<1x128xf32>, i32 -> vector<1x128xf32>
      %30 = arith.addf %28, %29 : vector<1x128xf32>
      %c104_i32 = arith.constant 104 : i32
      %31 = tpu.dynamic_rotate %6 by %c104_i32 dim 1 : vector<1x128xf32>, i32 -> vector<1x128xf32>
      %32 = arith.addf %30, %31 : vector<1x128xf32>
      %c112_i32 = arith.constant 112 : i32
      %33 = tpu.dynamic_rotate %6 by %c112_i32 dim 1 : vector<1x128xf32>, i32 -> vector<1x128xf32>
      %34 = arith.addf %32, %33 : vector<1x128xf32>
      %c120_i32 = arith.constant 120 : i32
      %35 = tpu.dynamic_rotate %6 by %c120_i32 dim 1 : vector<1x128xf32>, i32 -> vector<1x128xf32>
      %36 = arith.addf %34, %35 : vector<1x128xf32>
      %cst = arith.constant 0.001953125 : f32
      %37 = vector.broadcast %cst : f32 to vector<1x128xf32>
      %38 = arith.mulf %36, %37 : vector<1x128xf32>
      %c0_3 = arith.constant 0 : index
      %c0_4 = arith.constant 0 : index
      %39 = vector.load %arg9[%c0_3, %c0_4] : memref<1x128xf32, #tpu.memory_space<vmem>>, vector<1x128xf32>
      %c8_i32_5 = arith.constant 8 : i32
      %40 = tpu.dynamic_rotate %39 by %c8_i32_5 dim 1 : vector<1x128xf32>, i32 -> vector<1x128xf32>
      %41 = arith.addf %39, %40 : vector<1x128xf32>
      %c16_i32_6 = arith.constant 16 : i32
      %42 = tpu.dynamic_rotate %39 by %c16_i32_6 dim 1 : vector<1x128xf32>, i32 -> vector<1x128xf32>
      %43 = arith.addf %41, %42 : vector<1x128xf32>
      %c24_i32_7 = arith.constant 24 : i32
      %44 = tpu.dynamic_rotate %39 by %c24_i32_7 dim 1 : vector<1x128xf32>, i32 -> vector<1x128xf32>
      %45 = arith.addf %43, %44 : vector<1x128xf32>
      %c32_i32_8 = arith.constant 32 : i32
      %46 = tpu.dynamic_rotate %39 by %c32_i32_8 dim 1 : vector<1x128xf32>, i32 -> vector<1x128xf32>
      %47 = arith.addf %45, %46 : vector<1x128xf32>
      %c40_i32_9 = arith.constant 40 : i32
      %48 = tpu.dynamic_rotate %39 by %c40_i32_9 dim 1 : vector<1x128xf32>, i32 -> vector<1x128xf32>
      %49 = arith.addf %47, %48 : vector<1x128xf32>
      %c48_i32_10 = arith.constant 48 : i32
      %50 = tpu.dynamic_rotate %39 by %c48_i32_10 dim 1 : vector<1x128xf32>, i32 -> vector<1x128xf32>
      %51 = arith.addf %49, %50 : vector<1x128xf32>
      %c56_i32_11 = arith.constant 56 : i32
      %52 = tpu.dynamic_rotate %39 by %c56_i32_11 dim 1 : vector<1x128xf32>, i32 -> vector<1x128xf32>
      %53 = arith.addf %51, %52 : vector<1x128xf32>
      %c64_i32_12 = arith.constant 64 : i32
      %54 = tpu.dynamic_rotate %39 by %c64_i32_12 dim 1 : vector<1x128xf32>, i32 -> vector<1x128xf32>
      %55 = arith.addf %53, %54 : vector<1x128xf32>
      %c72_i32_13 = arith.constant 72 : i32
      %56 = tpu.dynamic_rotate %39 by %c72_i32_13 dim 1 : vector<1x128xf32>, i32 -> vector<1x128xf32>
      %57 = arith.addf %55, %56 : vector<1x128xf32>
      %c80_i32_14 = arith.constant 80 : i32
      %58 = tpu.dynamic_rotate %39 by %c80_i32_14 dim 1 : vector<1x128xf32>, i32 -> vector<1x128xf32>
      %59 = arith.addf %57, %58 : vector<1x128xf32>
      %c88_i32_15 = arith.constant 88 : i32
      %60 = tpu.dynamic_rotate %39 by %c88_i32_15 dim 1 : vector<1x128xf32>, i32 -> vector<1x128xf32>
      %61 = arith.addf %59, %60 : vector<1x128xf32>
      %c96_i32_16 = arith.constant 96 : i32
      %62 = tpu.dynamic_rotate %39 by %c96_i32_16 dim 1 : vector<1x128xf32>, i32 -> vector<1x128xf32>
      %63 = arith.addf %61, %62 : vector<1x128xf32>
      %c104_i32_17 = arith.constant 104 : i32
      %64 = tpu.dynamic_rotate %39 by %c104_i32_17 dim 1 : vector<1x128xf32>, i32 -> vector<1x128xf32>
      %65 = arith.addf %63, %64 : vector<1x128xf32>
      %c112_i32_18 = arith.constant 112 : i32
      %66 = tpu.dynamic_rotate %39 by %c112_i32_18 dim 1 : vector<1x128xf32>, i32 -> vector<1x128xf32>
      %67 = arith.addf %65, %66 : vector<1x128xf32>
      %c120_i32_19 = arith.constant 120 : i32
      %68 = tpu.dynamic_rotate %39 by %c120_i32_19 dim 1 : vector<1x128xf32>, i32 -> vector<1x128xf32>
      %69 = arith.addf %67, %68 : vector<1x128xf32>
      %cst_20 = arith.constant 0.001953125 : f32
      %70 = vector.broadcast %cst_20 : f32 to vector<1x128xf32>
      %71 = arith.mulf %69, %70 : vector<1x128xf32>
      %72 = arith.mulf %38, %38 : vector<1x128xf32>
      %73 = arith.subf %71, %72 : vector<1x128xf32>
      %cst_21 = arith.constant 0.000000e+00 : f32
      %74 = vector.broadcast %cst_21 : f32 to vector<1x128xf32>
      %75 = arith.maximumf %73, %74 : vector<1x128xf32>
      %c0_22 = arith.constant 0 : index
      %c0_23 = arith.constant 0 : index
      %76 = vector.load %arg4[%c0_22, %c0_23] : memref<1x128xf32, #tpu.memory_space<vmem>>, vector<1x128xf32>
      %cst_24 = arith.constant 9.99999974E-6 : f32
      %77 = vector.broadcast %cst_24 : f32 to vector<1x128xf32>
      %78 = arith.addf %75, %77 : vector<1x128xf32>
      %79 = math.rsqrt %78 : vector<1x128xf32>
      %80 = arith.mulf %76, %79 : vector<1x128xf32>
      %c0_25 = arith.constant 0 : index
      %c0_26 = arith.constant 0 : index
      %81 = vector.load %arg5[%c0_25, %c0_26] : memref<1x128xf32, #tpu.memory_space<vmem>>, vector<1x128xf32>
      %82 = arith.mulf %38, %80 : vector<1x128xf32>
      %83 = arith.subf %81, %82 : vector<1x128xf32>
      %c2_i32 = arith.constant 2 : i32
      %84 = arith.muli %arg1, %c2_i32 : i32
      %c0_i32_27 = arith.constant 0 : i32
      %85 = arith.addi %84, %c0_i32_27 : i32
      %86 = arith.index_cast %85 : i32 to index
      %c0_28 = arith.constant 0 : index
      %c0_29 = arith.constant 0 : index
      %87 = vector.load %arg7[%86, %c0_28, %c0_29] : memref<2x16x128xf32, #tpu.memory_space<vmem>>, vector<1x16x128xf32>
      %88 = vector.shape_cast %87 : vector<1x16x128xf32> to vector<16x128xf32>
      %89 = vector.broadcast %80 : vector<1x128xf32> to vector<16x128xf32>
      %90 = arith.mulf %88, %89 : vector<16x128xf32>
      %91 = vector.broadcast %83 : vector<1x128xf32> to vector<16x128xf32>
      %92 = arith.addf %90, %91 : vector<16x128xf32>
      %cst_30 = arith.constant 0.000000e+00 : f32
      %93 = vector.broadcast %cst_30 : f32 to vector<16x128xf32>
      %94 = arith.maximumf %92, %93 : vector<16x128xf32>
      %c0_31 = arith.constant 0 : index
      %c0_32 = arith.constant 0 : index
      %95 = vector.load %arg6[%c0_31, %c0_32] : memref<32x128xf32, #tpu.memory_space<vmem>>, vector<16x128xf32>
      tpu.vector_store %arg6[%c0_31, %c0_32], %94 {strides = array<i32>} : memref<32x128xf32, #tpu.memory_space<vmem>>, vector<16x128xf32>,
      %c2_i32_33 = arith.constant 2 : i32
      %96 = arith.muli %arg1, %c2_i32_33 : i32
      %c1_i32_34 = arith.constant 1 : i32
      %97 = arith.addi %96, %c1_i32_34 : i32
      %98 = arith.index_cast %97 : i32 to index
      %c0_35 = arith.constant 0 : index
      %c0_36 = arith.constant 0 : index
      %99 = vector.load %arg7[%98, %c0_35, %c0_36] : memref<2x16x128xf32, #tpu.memory_space<vmem>>, vector<1x16x128xf32>
      %100 = vector.shape_cast %99 : vector<1x16x128xf32> to vector<16x128xf32>
      %101 = vector.broadcast %80 : vector<1x128xf32> to vector<16x128xf32>
      %102 = arith.mulf %100, %101 : vector<16x128xf32>
      %103 = vector.broadcast %83 : vector<1x128xf32> to vector<16x128xf32>
      %104 = arith.addf %102, %103 : vector<16x128xf32>
      %cst_37 = arith.constant 0.000000e+00 : f32
      %105 = vector.broadcast %cst_37 : f32 to vector<16x128xf32>
      %106 = arith.maximumf %104, %105 : vector<16x128xf32>
      %c16 = arith.constant 16 : index
      %c0_38 = arith.constant 0 : index
      %107 = vector.load %arg6[%c16, %c0_38] : memref<32x128xf32, #tpu.memory_space<vmem>>, vector<16x128xf32>
      tpu.vector_store %arg6[%c16, %c0_38], %106 {strides = array<i32>} : memref<32x128xf32, #tpu.memory_space<vmem>>, vector<16x128xf32>,
    } else {
    }
    return
  }
  func.func @transform_0(%arg0: i32, %arg1: i32) -> (i32, i32, i32) {
    %c1_i32 = arith.constant 1 : i32
    %0 = arith.subi %c1_i32, %arg0 : i32
    %1 = arith.muli %arg1, %0 : i32
    %c0_i32 = arith.constant 0 : i32
    %c0_i32_0 = arith.constant 0 : i32
    %c0_i32_1 = arith.constant 0 : i32
    return %1, %c0_i32, %c0_i32_0 : i32, i32, i32
  }
  func.func @transform_1(%arg0: i32, %arg1: i32) -> (i32, i32, i32) {
    %c0_i32 = arith.constant 0 : i32
    %c0_i32_0 = arith.constant 0 : i32
    %c0_i32_1 = arith.constant 0 : i32
    %c0_i32_2 = arith.constant 0 : i32
    return %c0_i32, %c0_i32_0, %c0_i32_1 : i32, i32, i32
  }
  func.func @transform_2(%arg0: i32, %arg1: i32) -> (i32, i32) {
    %c0_i32 = arith.constant 0 : i32
    %c0_i32_0 = arith.constant 0 : i32
    %c0_i32_1 = arith.constant 0 : i32
    return %c0_i32, %c0_i32_0 : i32, i32
  }
  func.func @transform_3(%arg0: i32, %arg1: i32) -> (i32, i32) {
    %c0_i32 = arith.constant 0 : i32
    %c0_i32_0 = arith.constant 0 : i32
    %c0_i32_1 = arith.constant 0 : i32
    return %c0_i32, %c0_i32_0 : i32, i32
  }
  func.func @transform_4(%arg0: i32, %arg1: i32) -> (i32, i32) {
    %0 = arith.muli %arg0, %arg1 : i32
    %c0_i32 = arith.constant 0 : i32
    %c0_i32_0 = arith.constant 0 : i32
    return %0, %c0_i32 : i32, i32
  }
}

</mosaic_0001>

<bundles_post_ra>
// kernel: tpu_custom_call.1
= control target key start
LH: loop header
LB: loop body
LE: loop exit
PB: predicated region body
PF: predicated region fallthrough
CT: control target
= control target key end

     0   :  { %9 = vsyncpa [#allocation6], 0  ;;  %s1774_s0 = inlined_call_operand.vmem [shape: bf16[2,18,72], index: 0, kind: input, shape index: {}]   ;;  %s1775_s1 = inlined_call_operand.hbm [shape: bf16[3,72,128], index: 1, kind: input, shape index: {}]   ;;  %s1776_s2 = inlined_call_operand.vmem [shape: f32[1,128], index: 2, kind: input, shape index: {}]   ;;  %s1777_s3 = inlined_call_operand.vmem [shape: f32[1,128], index: 3, kind: input, shape index: {}]   ;;  %s1778_s4 = inlined_call_operand.hbm [shape: f32[32,128], index: 4, kind: output, shape index: {}]  }
   0x1   :  { %10 = vsyncpa [#allocation7], 0 }
   0x2   :  { %12 = vsyncpa [#allocation7 + $0x1], 0  ;;  %s1560_s15 = smov 0   ;;  %s1562_s16 = smov 0  }
   0x3   :  { %s1564_s17 = smov 0  }
   0x4 LB: > { %s1125_s18 = sadd.s32 4294967295, %s1510_s17   ;;  %s1126_s19 = sadd.s32 4294967294, %s1510_s17   ;;  %s1510_s17 = sphi %s1564_s17, %s18_s17   ;;  %s1506_s16 = sphi %s1562_s16, %s1789_s16   ;;  %s1502_s15 = sphi %s1560_s15, %s1788_s15  }
   0x5   : > { %s30_s20 = sadd.s32 1, %s1506_s16  ;;  %p1127_p0 = scmp.ge.s32.totalorder %s1510_s17, 1 }
   0x6   : > { %p32_p1 = scmp.ge.s32.totalorder %s30_s20, 2  ;;  %p156_p2 = scmp.lt.s32.totalorder %s1510_s17, 3 }
   0x7   : > { %p1582_p3 = scmp.eq.s32.totalorder %s1125_s18, 0  ;;  %s1512_s23 = smov [#allocation5]  }
   0x8   : > { %s1791_s20 = smov (%p32_p1, %s30_s20), 0  ;;  %p1588_p4 = pnand %p1127_p0, %p156_p2 }
   0x9   : > { %s1782_s21 = scalar_select %p1582_p3, 1, 0 }
   0xa   : > { %s1783_s22 = scalar_select %p1588_p4, 1, 0 }
   0xb   : > { %s168_s24 = sshll.u32 %s1512_s23, 4  ;;  %p1330_p5 = pneg %p1588_p4  ;;  %s169_s24 = int_to_ptr.vmem [resolvable:$true] %s168_s24 }
   0xc   : > { %s1426_s28 = scalar_lea.hbm %s1775_s1, 1728 }
   0xd   : > { %p1596_p6 = pnand %p1582_p3, %p1330_p5  ;;  %p1427_p7 = scmp.ne.s32.totalorder %s1775_s1, %s1426_s28 }
   0xe   : > { %p1433_p11 = scmp.lt.u32.totalorder %s1426_s28, %s1775_s1 }
   0xf   : > { %p1428_p8 = pneg %p1596_p6 }
  0x11   : > { %p1429_p9 = pnand %p1428_p8, %p1427_p7 }
  0x13   : > { %p1430_p10 = pneg %p1429_p9 }
  0x15   : > { %p1435_p12 = pnand %p1433_p11, %p1430_p10 }
  0x17   : > { %1438 = shalt.err (!%p1435_p12)
}
  0x18   : > { %s1439_s7 = scalar_lea.vmem %s169_s24, 1728  ;;  %p1447_p2 = scmp.lt.s32.totalorder %s169_s24, %s169_s24 }
  0x19   : > { %p1440_p13 = scmp.ne.s32.totalorder %s169_s24, %s1439_s7  ;;  %p1448_p5 = scmp.lt.s32.totalorder %s1439_s7, %s1439_s7 }
  0x1b   : > { %p1442_p0 = pnand %p1440_p13, %p1428_p8  ;;  %p1449_p3 = por %p1448_p5, %p1447_p2 }
  0x1d   : > { %p1443_p1 = pneg %p1442_p0 }
  0x1f   : > { %p1450_p4 = pnand %p1449_p3, %p1443_p1 }
  0x21   : > { %1453 = shalt.err (!%p1450_p4)
}
  0x22   : > { %s1513_s8 = smov 64   ;;  %s1514_s9 = smov 4  }
  0x23   : > { %1333 = dma.hbm_to_vmem [thread:$0]  (!%p1596_p6), %s1775_s1, 1728, %s169_s24, [#allocation6], %s1513_s8, %s1513_s8, %s1514_s9  }
  0x24   : > { %p1785_p7 = scmp.ne.s32.totalorder %s1783_s22, 0 }
  0x25   : > { %p1786_p9 = scmp.ne.s32.totalorder (!%p1785_p7), %s1782_s21, 0 }
  0x26   : > { %204 = sbr.rel (%p1785_p7) target bundleno = 588 (0x24c), region = 36 }
  0x2d   : > { %1493 = dma.done.wait (%p1786_p9), [#allocation6], 1728  }
  0x2e   : > { %1495 = vsyncadd (%p1786_p9), [#allocation6], 4294965568  ;;  %p1133_p3 = scmp.ne.s32.totalorder %s1502_s15, 0 }
  0x2f   : > { %v1390_v0 = vld [vmem:[#allocation5 + $0x24] sm:$0xff] (!%p1133_p3)   ;;  %v1515_v1 = vmov (!%p1133_p3), 0.0   ;;  %v1392_v3 = vld [vmem:[#allocation5 + $0x2c] sm:$0xff] (!%p1133_p3)   ;;  %vm1516_vm0 = vmmov (!%p1133_p3), 0   ;;  %v1394_v5 = vld [vmem:[#allocation5 + $0x34] sm:$0xff] (!%p1133_p3)   ;;  %vm331_vm2 = vcmask (!%p1133_p3), 1043456  }
  0x30   : > { %250 = sbr.rel (%p1133_p3) target bundleno = 351 (0x15f), region = 44  ;;  %1222 = vmatprep.subr.bf16.mxu0 (!%p1133_p3), %v1515_v1  ;;  %255 = vst [vmem:[#allocation3] sm:$0x1] (!%p1133_p3), %v1515_v1  ;;  %256 = vst [vmem:[#allocation4] sm:$0x1] (!%p1133_p3), %v1515_v1  ;;  %1264 = vmatprep.subr.bf16.mxu1 (!%p1133_p3), %v1515_v1  ;;  %v1391_v2 = vld [vmem:[#allocation5 + $0x24] sm:$0xff] (!%p1133_p3)  }
  0x31   : > { %1223 = vmatpush3.bf16.msra.mxu0 (!%p1133_p3), %v1390_v0  ;;  %1265 = vmatpush3.bf16.msra.mxu1 (!%p1133_p3), %v1391_v2  ;;  %v1393_v4 = vld [vmem:[#allocation5 + $0x2c] sm:$0xff] (!%p1133_p3)   ;;  %v1395_v6 = vld [vmem:[#allocation5 + $0x34] sm:$0xff] (!%p1133_p3)   ;;  %v1398_v7 = vld [vmem:[#allocation5 + $0x44] ss:$0 sps:$4 sm:$0xff] (!%p1133_p3)   ;;  %vm287_vm1 = vsmask.f32 (!%p1133_p3), 7424 }
  0x32   : > { %1224 = vmatprep.subr.bf16.mxu0 (!%p1133_p3), %v1515_v1  ;;  %1266 = vmatprep.subr.bf16.mxu1 (!%p1133_p3), %v1515_v1  ;;  %v1396_v8 = vld [vmem:[#allocation5 + $0x3c] sm:$0xff] (!%p1133_p3)   ;;  %v1399_v9 = vld [vmem:[#allocation5 + $0x44] ss:$0 sps:$4 sm:$0xff] (!%p1133_p3)   ;;  %v1638_v10 = vld [vmem:[%s1774_s0] sm:$0xff] (!%p1133_p3)   ;;  %vm327_vm3 = vcmask (!%p1133_p3), 588800   ;;  %v333_v19 = vsel (!%p1133_p3), %vm331_vm2, %v1398_v7, 0 }
  0x33   : > { %1232 = vmatprep.mubr.msk.bf16.mxu0 (!%p1133_p3), %vm1516_vm0, %v1515_v1  ;;  %1274 = vmatprep.mubr.msk.bf16.mxu1 (!%p1133_p3), %vm1516_vm0, %v1515_v1  ;;  %v1397_v11 = vld [vmem:[#allocation5 + $0x3c] sm:$0xff] (!%p1133_p3)   ;;  %v1644_v12 = vld [vmem:[%s1774_s0 + $0x8] ss:$0 sps:$4 sm:$0x11] (!%p1133_p3)   ;;  %v289_v13 = vshrl.u32 (!%p1133_p3), %v1638_v10, 16  ;;  %v291_v14 = vshll.u32 (!%p1133_p3), %v1638_v10, 16 }
  0x34   : > { %v1652_v15 = vld [vmem:[%s1774_s0 + $0xc] sm:$0xff] (!%p1133_p3)   ;;  %v296_v16 = vshll.u32 (!%p1133_p3), %v1644_v12, 16  ;;  %v1658_v18 = vld [vmem:[%s1774_s0 + $0x14] ss:$0 sps:$4 sm:$0x11] (!%p1133_p3)   ;;  %v639_v23 = vsel (!%p1133_p3), %vm331_vm2, %v1399_v9, 0 }
  0x35   : > { %1225 = vmatpush3.bf16.msra.mxu0 (!%p1133_p3), %v1392_v3  ;;  %1267 = vmatpush3.bf16.msra.mxu1 (!%p1133_p3), %v1393_v4  ;;  %v293_v17 = vrot.slane (!%p1133_p3), %v291_v14, 1  ;;  %v597_v21 = vshrl.u32 (!%p1133_p3), %v1652_v15, 16  ;;  %v599_v22 = vshll.u32 (!%p1133_p3), %v1652_v15, 16  ;;  %v604_v25 = vshll.u32 (!%p1133_p3), %v1658_v18, 16  ;;  %v1402_v26 = vld [vmem:[#allocation5] sm:$0xff] (!%p1133_p3)   ;;  %v1406_v33 = vld [vmem:[#allocation5 + $0x8] sm:$0xff] (!%p1133_p3)  }
  0x36   : > { %1226 = vmatprep.subr.bf16.mxu0 (!%p1133_p3), %v1515_v1  ;;  %1268 = vmatprep.subr.bf16.mxu1 (!%p1133_p3), %v1515_v1  ;;  %v298_v20 = vrot.slane (!%p1133_p3), %v296_v16, 1  ;;  %v1405_v30 = vld [vmem:[#allocation5] sm:$0xff] (!%p1133_p3)   ;;  %v1407_v34 = vld [vmem:[#allocation5 + $0x8] sm:$0xff] (!%p1133_p3)   ;;  %v1408_v35 = vld [vmem:[#allocation5 + $0x10] sm:$0xff] (!%p1133_p3)   ;;  %v460_v53 = vrot.slane (!%p1133_p3), %v1638_v10, 1  ;;  %v461_v54 = vrot.slane (!%p1133_p3), %v1644_v12, 1 }
  0x37   : > { %v294_v24 = vor.u32 %v293_v17, %v289_v13  ;;  %v601_v27 = vrot.slane %v599_v22, 1  ;;  %v606_v29 = vrot.slane %v604_v25, 1  ;;  %v1409_v36 = vld [vmem:[#allocation5 + $0x10] sm:$0xff]   ;;  %v1410_v37 = vld [vmem:[#allocation5 + $0x18] sm:$0xff]   ;;  %v1412_v39 = vld [vmem:[#allocation5 + $0x20] ss:$0 sps:$4 sm:$0xff]  }
  0x38   : > { %v1411_v38 = vld [vmem:[#allocation5 + $0x18] sm:$0xff]   ;;  %v1413_v40 = vld [vmem:[#allocation5 + $0x20] ss:$0 sps:$4 sm:$0xff]   ;;  %v406_v41 = vsel %vm331_vm2, %v1412_v39, 0  ;;  %v1414_v43 = vld [vmem:[#allocation5 + $0x48] sm:$0xff]   ;;  %vm459_vm4 = vcmask 1046528  }
  0x39   : > { %1227 = vmatpush3.bf16.msra.mxu0 %v1394_v5  ;;  %1269 = vmatpush3.bf16.msra.mxu1 %v1395_v6  ;;  %v299_v28 = vsel %vm287_vm1, %v294_v24, %v298_v20  ;;  %v602_v31 = vor.u32 %v601_v27, %v597_v21  ;;  %v712_v42 = vsel %vm331_vm2, %v1413_v40, 0  ;;  %v1415_v44 = vld [vmem:[#allocation5 + $0x48] sm:$0xff]   ;;  %v1416_v45 = vld [vmem:[#allocation5 + $0x50] sm:$0xff]   ;;  %v1418_v47 = vld [vmem:[#allocation5 + $0x58] sm:$0xff]   ;;  %v764_v56 = vrot.slane %v1652_v15, 1 }
  0x3a   : > { %1228 = vmatprep.subr.bf16.mxu0 %v1515_v1  ;;  %1270 = vmatprep.subr.bf16.mxu1 %v1515_v1  ;;  %v1417_v46 = vld [vmem:[#allocation5 + $0x50] sm:$0xff]   ;;  %v1419_v48 = vld [vmem:[#allocation5 + $0x58] sm:$0xff]   ;;  %v1420_v49 = vld [vmem:[#allocation5 + $0x60] sm:$0xff]   ;;  %v765_v57 = vrot.slane %v1658_v18, 1  ;;  %v462_v59 = vsel %vm459_vm4, %v460_v53, %v461_v54 }
  0x3b   : > { %v607_v32 = vsel %vm287_vm1, %v602_v31, %v606_v29  ;;  %v1421_v50 = vld [vmem:[#allocation5 + $0x60] sm:$0xff]   ;;  %v1422_v51 = vld [vmem:[#allocation5 + $0x68] ss:$0 sps:$4 sm:$0xff]   ;;  %v544_v27 = vld [vmem:[#allocation3] sm:$0x1] }
  0x3c   : > { %v1423_v52 = vld [vmem:[#allocation5 + $0x68] ss:$0 sps:$4 sm:$0xff]   ;;  %v494_v55 = vsel %vm331_vm2, %v1422_v51, 0  ;;  %v766_v60 = vsel %vm459_vm4, %v764_v56, %v765_v57  ;;  %v554_v31 = vld [vmem:[#allocation4] sm:$0x1] }
  0x3d   : > { %1229 = vmatpush3.bf16.msra.mxu0 %v1396_v8  ;;  %1271 = vmatpush3.bf16.msra.mxu1 %v1397_v11  ;;  %v798_v58 = vsel %vm331_vm2, %v1423_v52, 0 }
  0x3e   : > { %1230 = vmatprep.subr.bf16.mxu0 %v1515_v1  ;;  %1272 = vmatprep.subr.bf16.mxu1 %v1515_v1 }
  0x41   : > { %1231 = vmatpush3.bf16.msra.mxu0 %v333_v19  ;;  %1273 = vmatpush3.bf16.msra.mxu1 %v639_v23 }
  0x42   : > { %1236 = vmatprep.subr.bf16.mxu0 %v1515_v1  ;;  %1278 = vmatprep.subr.bf16.mxu1 %v1515_v1 }
  0x44   : > { %1233 = vmatmul.mubr.msk.bf16.vlgmr.msra.gmra.mrb[0].mxu0 %vm327_vm3, %v299_v28  ;;  %1275 = vmatmul.mubr.msk.bf16.vlgmr.msra.gmra.mrb[0].mxu1 %vm327_vm3, %v607_v32 }
  0x45   : > { %1237 = vmatpush3.bf16.msra.mxu0 %v1402_v26  ;;  %1279 = vmatpush3.bf16.msra.mxu1 %v1405_v30 }
  0x46   : > { %1238 = vmatprep.subr.bf16.mxu0 %v1515_v1  ;;  %1280 = vmatprep.subr.bf16.mxu1 %v1515_v1 }
  0x47   : > { %1246 = vmatprep.mubr.msk.bf16.mxu0 %vm1516_vm0, %v1515_v1  ;;  %1288 = vmatprep.mubr.msk.bf16.mxu1 %vm1516_vm0, %v1515_v1 }
  0x49   : > { %1239 = vmatpush3.bf16.msra.mxu0 %v1406_v33  ;;  %1281 = vmatpush3.bf16.msra.mxu1 %v1407_v34 }
  0x4a   : > { %1240 = vmatprep.subr.bf16.mxu0 %v1515_v1  ;;  %1282 = vmatprep.subr.bf16.mxu1 %v1515_v1 }
  0x4d   : > { %1241 = vmatpush3.bf16.msra.mxu0 %v1408_v35  ;;  %1283 = vmatpush3.bf16.msra.mxu1 %v1409_v36 }
  0x4e   : > { %1242 = vmatprep.subr.bf16.mxu0 %v1515_v1  ;;  %1284 = vmatprep.subr.bf16.mxu1 %v1515_v1 }
  0x51   : > { %1243 = vmatpush3.bf16.msra.mxu0 %v1410_v37  ;;  %1285 = vmatpush3.bf16.msra.mxu1 %v1411_v38 }
  0x52   : > { %1244 = vmatprep.subr.bf16.mxu0 %v1515_v1  ;;  %1286 = vmatprep.subr.bf16.mxu1 %v1515_v1 }
  0x55   : > { %1245 = vmatpush3.bf16.msra.mxu0 %v406_v41  ;;  %1287 = vmatpush3.bf16.msra.mxu1 %v712_v42 }
  0x56   : > { %1250 = vmatprep.subr.bf16.mxu0 %v1515_v1  ;;  %1292 = vmatprep.subr.bf16.mxu1 %v1515_v1 }
  0x58   : > { %1247 = vmatmul.mubr.msk.bf16.vlgmr.msra.gmra.mrb[0].mxu0 %vm327_vm3, %v1638_v10  ;;  %1289 = vmatmul.mubr.msk.bf16.vlgmr.msra.gmra.mrb[0].mxu1 %vm327_vm3, %v1652_v15 }
  0x59   : > { %1251 = vmatpush3.bf16.msra.mxu0 %v1414_v43  ;;  %1293 = vmatpush3.bf16.msra.mxu1 %v1415_v44 }
  0x5a   : > { %1252 = vmatprep.subr.bf16.mxu0 %v1515_v1  ;;  %1294 = vmatprep.subr.bf16.mxu1 %v1515_v1 }
  0x5b   : > { %1260 = vmatprep.mubr.msk.bf16.mxu0 %vm1516_vm0, %v1515_v1  ;;  %1302 = vmatprep.mubr.msk.bf16.mxu1 %vm1516_vm0, %v1515_v1 }
  0x5d   : > { %1253 = vmatpush3.bf16.msra.mxu0 %v1416_v45  ;;  %1295 = vmatpush3.bf16.msra.mxu1 %v1417_v46 }
  0x5e   : > { %1254 = vmatprep.subr.bf16.mxu0 %v1515_v1  ;;  %1296 = vmatprep.subr.bf16.mxu1 %v1515_v1 }
  0x61   : > { %1255 = vmatpush3.bf16.msra.mxu0 %v1418_v47  ;;  %1297 = vmatpush3.bf16.msra.mxu1 %v1419_v48 }
  0x62   : > { %1256 = vmatprep.subr.bf16.mxu0 %v1515_v1  ;;  %1298 = vmatprep.subr.bf16.mxu1 %v1515_v1 }
  0x65   : > { %1257 = vmatpush3.bf16.msra.mxu0 %v1420_v49  ;;  %1299 = vmatpush3.bf16.msra.mxu1 %v1421_v50 }
  0x66   : > { %1258 = vmatprep.subr.bf16.mxu0 %v1515_v1  ;;  %1300 = vmatprep.subr.bf16.mxu1 %v1515_v1 }
  0x69   : > { %1259 = vmatpush3.bf16.msra.mxu0 %v494_v55  ;;  %1301 = vmatpush3.bf16.msra.mxu1 %v798_v58 }
  0x6c   : > { %1261 = vmatmul.mubr.msk.bf16.vlgmr.msra.gmra.mrb[0].mxu0 %vm327_vm3, %v462_v59  ;;  %1303 = vmatmul.mubr.msk.bf16.vlgmr.msra.gmra.mrb[0].mxu1 %vm327_vm3, %v766_v60 }
 0x13f   : > { %v530_v61 = vpop.f32.mrb[0].mxu0  ;;  %v834_v62 = vpop.f32.mrb[0].mxu1 }
 0x140   : > { %542 = vst [vmem:[#allocation2] sm:$0xff] %v530_v61  ;;  %v1262_v63 = vpop.f32.mrb[1].mxu0  ;;  %1177 = vst [vmem:[#allocation2 + $0x10] sm:$0xff] %v834_v62  ;;  %v1304_v0 = vpop.f32.mrb[1].mxu1  ;;  %v555_v3 = vmul.f32 %v530_v61, %v530_v61  ;;  %v859_v7 = vmul.f32 %v834_v62, %v834_v62 }
 0x141   : > { %v533_v2 = vpop.f32.mrb[2].mxu0  ;;  %v837_v5 = vpop.f32.mrb[2].mxu1 }
 0x142   : > { %543 = vst [vmem:[#allocation2 + $0x8] sm:$0xff] %v533_v2  ;;  %v545_v1 = vadd.f32 %v533_v2, %v530_v61  ;;  %v556_v4 = vmul.f32 %v533_v2, %v533_v2  ;;  %v1263_v6 = vpop.f32.mrb[3].mxu0  ;;  %1178 = vst [vmem:[#allocation2 + $0x18] sm:$0xff] %v837_v5  ;;  %v849_v8 = vadd.f32 %v837_v5, %v834_v62  ;;  %v1305_v10 = vpop.f32.mrb[3].mxu1 }
 0x143   : > { %v860_v9 = vmul.f32 %v837_v5, %v837_v5 }
 0x144   : > { %v546_v11 = vrot.slane %v545_v1, 4  ;;  %v557_v12 = vadd.f32 %v556_v4, %v555_v3  ;;  %v850_v13 = vrot.slane %v849_v8, 4 }
 0x145   : > { %v861_v14 = vadd.f32 %v860_v9, %v859_v7 }
 0x146   : > { %v547_v15 = vadd.f32 %v546_v11, %v545_v1  ;;  %v558_v16 = vrot.slane %v557_v12, 4  ;;  %v851_v20 = vadd.f32 %v850_v13, %v849_v8 }
 0x147   : > { %v862_v17 = vrot.slane %v861_v14, 4 }
 0x148   : > { %v548_v18 = vrot.slane %v547_v15, 2  ;;  %v559_v19 = vadd.f32 %v558_v16, %v557_v12  ;;  %v852_v26 = vrot.slane %v851_v20, 2 }
 0x149   : > { %v863_v23 = vadd.f32 %v862_v17, %v861_v14 }
 0x14a   : > { %v549_v21 = vadd.f32 %v548_v18, %v547_v15  ;;  %v560_v22 = vrot.slane %v559_v19, 2  ;;  %v853_v34 = vadd.f32 %v852_v26, %v851_v20 }
 0x14b   : > { %v864_v30 = vrot.slane %v863_v23, 2 }
 0x14c   : > { %v550_v24 = vrot.slane %v549_v21, 1  ;;  %v561_v25 = vadd.f32 %v560_v22, %v559_v19  ;;  %v854_v37 = vrot.slane %v853_v34, 1 }
 0x14d   : > { %v865_v36 = vadd.f32 %v864_v30, %v863_v23 }
 0x14e   : > { %v551_v28 = vadd.f32 %v550_v24, %v549_v21  ;;  %v562_v29 = vrot.slane %v561_v25, 1  ;;  %v855_v39 = vadd.f32 %v854_v37, %v853_v34 }
 0x14f   : > { %v866_v38 = vrot.slane %v865_v36, 1 }
 0x150   : > { %v552_v32 = vadd.f32 %v551_v28, %v544_v27  ;;  %v563_v33 = vadd.f32 %v562_v29, %v561_v25 }
 0x151   : > { %v867_v42 = vadd.f32 %v866_v38, %v865_v36 }
 0x152   : > { %553 = vst [vmem:[#allocation3] sm:$0x1] %v552_v32  ;;  %v564_v35 = vadd.f32 %v563_v33, %v554_v31 }
 0x154   : > { %565 = vst [vmem:[#allocation4] sm:$0x1] %v564_v35 }
 0x159   : > { %v848_v40 = vld [vmem:[#allocation3] sm:$0x1] }
 0x15a   : > { %v856_v41 = vadd.f32 %v855_v39, %v848_v40 }
 0x15b   : > { %v858_v43 = vld [vmem:[#allocation4] sm:$0x1] }
 0x15c   : > { %857 = vst [vmem:[#allocation3] sm:$0x1] %v856_v41  ;;  %v868_v44 = vadd.f32 %v867_v42, %v858_v43 }
 0x15e   : > { %869 = vst [vmem:[#allocation4] sm:$0x1] %v868_v44 }
 0x15f PF: > { %p1179_p4 = scmp.ne.s32.totalorder %s1502_s15, 1 }
 0x160   : > { %s1517_s26 = smov (!%p1179_p4), 8   ;;  %s1518_s27 = smov (!%p1179_p4), 24  }
 0x161   : > { %873 = sbr.rel (%p1179_p4) target bundleno = 564 (0x234), region = 52  ;;  %s1519_s28 = smov (!%p1179_p4), 16  }
 0x162   : > { %s1520_s29 = smov (!%p1179_p4), 32   ;;  %s1521_s30 = smov (!%p1179_p4), 40  }
 0x163   : > { %v874_v46 = vld [vmem:[#allocation3] sm:$0x1] (!%p1179_p4)  ;;  %s1522_s15 = smov (!%p1179_p4), 48   ;;  %s1523_s5 = smov (!%p1179_p4), 56  }
 0x164   : > { %875 = vrot.lane.b32.xlu0 (!%p1179_p4), %v874_v46, %s1517_s26  ;;  %s1524_s6 = smov (!%p1179_p4), 64   ;;  %s1525_s7 = smov (!%p1179_p4), 72  }
 0x165   : > { %v1714_v45 = vld [vmem:[#allocation4] sm:$0x1] (!%p1179_p4)  ;;  %s1526_s8 = smov (!%p1179_p4), 80   ;;  %s1527_s9 = smov (!%p1179_p4), 88  }
 0x166   : > { %922 = vrot.lane.b32.xlu1 (!%p1179_p4), %v1714_v45, %s1517_s26  ;;  %s1528_s10 = smov (!%p1179_p4), 96   ;;  %s1529_s11 = smov (!%p1179_p4), 104  }
 0x167   : > { %s1530_s12 = smov (!%p1179_p4), 112   ;;  %s1531_s13 = smov (!%p1179_p4), 120  }
 0x168   : > { %878 = vrot.lane.b32.xlu0 %v874_v46, %s1519_s28 }
 0x16a   : > { %881 = vrot.lane.b32.xlu1 %v874_v46, %s1518_s27 }
 0x16c   : > { %925 = vrot.lane.b32.xlu0 %v1714_v45, %s1519_s28 }
 0x16e   : > { %884 = vrot.lane.b32.xlu1 %v874_v46, %s1520_s29 }
 0x170   : > { %928 = vrot.lane.b32.xlu0 %v1714_v45, %s1518_s27 }
 0x172   : > { %887 = vrot.lane.b32.xlu1 %v874_v46, %s1521_s30 }
 0x174   : > { %931 = vrot.lane.b32.xlu0 %v1714_v45, %s1520_s29 }
 0x176   : > { %890 = vrot.lane.b32.xlu1 %v874_v46, %s1522_s15 }
 0x178   : > { %934 = vrot.lane.b32.xlu0 %v1714_v45, %s1521_s30 }
 0x17a   : > { %893 = vrot.lane.b32.xlu1 %v874_v46, %s1523_s5 }
 0x17c   : > { %937 = vrot.lane.b32.xlu0 %v1714_v45, %s1522_s15 }
 0x17e   : > { %896 = vrot.lane.b32.xlu1 %v874_v46, %s1524_s6 }
 0x180   : > { %940 = vrot.lane.b32.xlu0 %v1714_v45, %s1523_s5 }
 0x182   : > { %899 = vrot.lane.b32.xlu1 %v874_v46, %s1525_s7 }
 0x184   : > { %943 = vrot.lane.b32.xlu0 %v1714_v45, %s1524_s6 }
 0x186   : > { %902 = vrot.lane.b32.xlu1 %v874_v46, %s1526_s8 }
 0x188   : > { %946 = vrot.lane.b32.xlu0 %v1714_v45, %s1525_s7 }
 0x18a   : > { %905 = vrot.lane.b32.xlu1 %v874_v46, %s1527_s9 }
 0x18c   : > { %949 = vrot.lane.b32.xlu0 %v1714_v45, %s1526_s8 }
 0x18e   : > { %908 = vrot.lane.b32.xlu1 %v874_v46, %s1528_s10 }
 0x190   : > { %952 = vrot.lane.b32.xlu0 %v1714_v45, %s1527_s9 }
 0x192   : > { %911 = vrot.lane.b32.xlu1 %v874_v46, %s1529_s11 }
 0x194   : > { %955 = vrot.lane.b32.xlu0 %v1714_v45, %s1528_s10 }
 0x196   : > { %914 = vrot.lane.b32.xlu1 %v874_v46, %s1530_s12 }
 0x198   : > { %958 = vrot.lane.b32.xlu0 %v1714_v45, %s1529_s11 }
 0x19a   : > { %917 = vrot.lane.b32.xlu1 %v874_v46, %s1531_s13 }
 0x19c   : > { %961 = vrot.lane.b32.xlu0 %v1714_v45, %s1530_s12 }
 0x19e   : > { %964 = vrot.lane.b32.xlu1 %v1714_v45, %s1531_s13 }
 0x1d6   : > { %v876_v48 = vpop.permute.xlu0 %875 }
 0x1d7   : > { %v877_v59 = vadd.f32 %v876_v48, %v874_v46 }
 0x1d8   : > { %v923_v47 = vpop.permute.xlu1 %922 }
 0x1d9   : > { %v924_v3 = vadd.f32 %v923_v47, %v1714_v45 }
 0x1da   : > { %v879_v50 = vpop.permute.xlu0 %878 }
 0x1db   : > { %v880_v60 = vadd.f32 %v879_v50, %v877_v59  ;;  %v982_v59 = vld [vmem:[#allocation2 + $0x8] sm:$0xff] }
 0x1dc   : > { %v882_v49 = vpop.permute.xlu1 %881 }
 0x1dd   : > { %v883_v63 = vadd.f32 %v882_v49, %v880_v60  ;;  %v984_v49 = vlaneseq  ;;  %v1180_v60 = vld [vmem:[#allocation2 + $0x10] sm:$0xff] }
 0x1de   : > { %v926_v52 = vpop.permute.xlu0 %925 }
 0x1df   : > { %v927_v6 = vadd.f32 %v926_v52, %v924_v3  ;;  %v985_v50 = vshrl.u32 %v984_v49, 7 }
 0x1e0   : > { %v885_v51 = vpop.permute.xlu1 %884 }
 0x1e1   : > { %v886_v1 = vadd.f32 %v885_v51, %v883_v63  ;;  %v971_v51 = vld [vmem:[%s1776_s2] sm:$0x1]  ;;  %v986_v52 = vsub.s32 0, %v985_v50 }
 0x1e2   : > { %v929_v54 = vpop.permute.xlu0 %928 }
 0x1e3   : > { %v930_v8 = vadd.f32 %v929_v54, %v927_v6 }
 0x1e4   : > { %v888_v53 = vpop.permute.xlu1 %887 }
 0x1e5   : > { %v889_v7 = vadd.f32 %v888_v53, %v886_v1 }
 0x1e6   : > { %v932_v56 = vpop.permute.xlu0 %931 }
 0x1e7   : > { %v933_v12 = vadd.f32 %v932_v56, %v930_v8  ;;  %v981_v56 = vld [vmem:[#allocation2] sm:$0xff] }
 0x1e8   : > { %v891_v55 = vpop.permute.xlu1 %890 }
 0x1e9   : > { %v892_v9 = vadd.f32 %v891_v55, %v889_v7  ;;  %v975_v55 = vld [vmem:[%s1777_s3] sm:$0x1] }
 0x1ea   : > { %v935_v58 = vpop.permute.xlu0 %934 }
 0x1eb   : > { %v936_v14 = vadd.f32 %v935_v58, %v933_v12 }
 0x1ec   : > { %v894_v57 = vpop.permute.xlu1 %893 }
 0x1ed   : > { %v895_v13 = vadd.f32 %v894_v57, %v892_v9 }
 0x1ee   : > { %v938_v62 = vpop.permute.xlu0 %937 }
 0x1ef   : > { %v939_v18 = vadd.f32 %v938_v62, %v936_v14 }
 0x1f0   : > { %v897_v61 = vpop.permute.xlu1 %896 }
 0x1f1   : > { %v898_v15 = vadd.f32 %v897_v61, %v895_v13  ;;  %v1181_v61 = vld [vmem:[#allocation2 + $0x18] sm:$0xff] }
 0x1f2   : > { %v941_v2 = vpop.permute.xlu0 %940 }
 0x1f3   : > { %v942_v20 = vadd.f32 %v941_v2, %v939_v18 }
 0x1f4   : > { %v900_v0 = vpop.permute.xlu1 %899 }
 0x1f5   : > { %v901_v19 = vadd.f32 %v900_v0, %v898_v15 }
 0x1f6   : > { %v944_v5 = vpop.permute.xlu0 %943 }
 0x1f7   : > { %v945_v24 = vadd.f32 %v944_v5, %v942_v20 }
 0x1f8   : > { %v903_v4 = vpop.permute.xlu1 %902 }
 0x1f9   : > { %v904_v21 = vadd.f32 %v903_v4, %v901_v19 }
 0x1fa   : > { %v947_v11 = vpop.permute.xlu0 %946 }
 0x1fb   : > { %v948_v26 = vadd.f32 %v947_v11, %v945_v24 }
 0x1fc   : > { %v906_v10 = vpop.permute.xlu1 %905 }
 0x1fd   : > { %v907_v25 = vadd.f32 %v906_v10, %v904_v21 }
 0x1fe   : > { %v950_v17 = vpop.permute.xlu0 %949 }
 0x1ff   : > { %v951_v30 = vadd.f32 %v950_v17, %v948_v26 }
 0x200   : > { %v909_v16 = vpop.permute.xlu1 %908 }
 0x201   : > { %v910_v27 = vadd.f32 %v909_v16, %v907_v25 }
 0x202   : > { %v953_v23 = vpop.permute.xlu0 %952 }
 0x203   : > { %v954_v32 = vadd.f32 %v953_v23, %v951_v30 }
 0x204   : > { %v912_v22 = vpop.permute.xlu1 %911 }
 0x205   : > { %v913_v31 = vadd.f32 %v912_v22, %v910_v27 }
 0x206   : > { %v956_v29 = vpop.permute.xlu0 %955 }
 0x207   : > { %v957_v36 = vadd.f32 %v956_v29, %v954_v32 }
 0x208   : > { %v915_v28 = vpop.permute.xlu1 %914 }
 0x209   : > { %v916_v33 = vadd.f32 %v915_v28, %v913_v31 }
 0x20a   : > { %v959_v35 = vpop.permute.xlu0 %958 }
 0x20b   : > { %v960_v38 = vadd.f32 %v959_v35, %v957_v36 }
 0x20c   : > { %v918_v34 = vpop.permute.xlu1 %917 }
 0x20d   : > { %v919_v37 = vadd.f32 %v918_v34, %v916_v33 }
 0x20e   : > { %v962_v39 = vpop.permute.xlu0 %961 }
 0x20f   : > { %v920_v41 = vmul.f32 0.001953125, %v919_v37  ;;  %v963_v42 = vadd.f32 %v962_v39, %v960_v38 }
 0x210   : > { %v965_v40 = vpop.permute.xlu1 %964 }
 0x211   : > { %v966_v43 = vadd.f32 %v965_v40, %v963_v42  ;;  %v968_v44 = vmul.f32 %v920_v41, %v920_v41 }
 0x213   : > { %v967_v45 = vmul.f32 0.001953125, %v966_v43 }
 0x215   : > { %v969_v46 = vsub.f32 %v967_v45, %v968_v44 }
 0x217   : > { %v970_v47 = vmax.f32 %v969_v46, 0.0 }
 0x219   : > { %v972_v48 = vadd.f32 1e-05, %v970_v47 }
 0x21b   : > { %1424 = vrsqrt.f32 %v972_v48 }
 0x225   : > { %v1425_v53 = vpop.eup %1424 }
 0x226   : > { %v974_v54 = vmul.f32 %v1425_v53, %v971_v51 }
 0x228   : > { %v976_v57 = vmul.f32 %v974_v54, %v920_v41  ;;  %v987_v58 = vrot.slane %v974_v54, %v986_v52 }
 0x22a   : > { %v977_v62 = vsub.f32 %v975_v55, %v976_v57  ;;  %v989_v63 = vmul.f32 %v987_v58, %v981_v56  ;;  %v990_v0 = vmul.f32 %v987_v58, %v982_v59  ;;  %v1008_v3 = vmul.f32 %v1180_v60, %v987_v58 }
 0x22b   : > { %v1009_v1 = vmul.f32 %v1181_v61, %v987_v58 }
 0x22c   : > { %v995_v2 = vrot.slane %v977_v62, %v986_v52 }
 0x22e   : > { %v997_v4 = vadd.f32 %v995_v2, %v989_v63  ;;  %v998_v5 = vadd.f32 %v995_v2, %v990_v0  ;;  %v1010_v6 = vadd.f32 %v1008_v3, %v995_v2  ;;  %v1011_v7 = vadd.f32 %v1009_v1, %v995_v2 }
 0x230   : > { %v999_v8 = vmax.f32 %v997_v4, 0.0  ;;  %v1000_v9 = vmax.f32 %v998_v5, 0.0  ;;  %v1012_v10 = vmax.f32 %v1010_v6, 0.0  ;;  %v1013_v11 = vmax.f32 %v1011_v7, 0.0 }
 0x232   : > { %1001 = vst [vmem:[#allocation8] sm:$0xff] %v999_v8  ;;  %1002 = vst [vmem:[#allocation8 + $0x8] sm:$0xff] %v1000_v9 }
 0x233   : > { %1014 = vst [vmem:[#allocation8 + $0x10] sm:$0xff] %v1012_v10  ;;  %1015 = vst [vmem:[#allocation8 + $0x18] sm:$0xff] %v1013_v11 }
 0x234 PF: > { %p1740_p6 = scmp.eq.s32.totalorder %s1125_s18, 1  ;;  %s1532_s25 = smov [#allocation8]  }
 0x235   : > { %s1031_s26 = sshll.u32 %s1532_s25, 4  ;;  %s1032_s26 = int_to_ptr.vmem [resolvable:$true] %s1031_s26 }
 0x236   : > { %s1454_s27 = scalar_lea.vmem %s1032_s26, 512  ;;  %s1460_s28 = scalar_lea.vmem %s1032_s26, 1024 }
 0x237   : > { %p1455_p8 = scmp.ne.s32.totalorder %s1032_s26, %s1454_s27  ;;  %p1461_p12 = scmp.lt.s32.totalorder %s1032_s26, %s1032_s26 }
 0x238   : > { %p1462_p13 = scmp.lt.s32.totalorder %s1460_s28, %s1454_s27 }
 0x239   : > { %p1456_p10 = pnand %p1455_p8, %p1740_p6 }
 0x23a   : > { %p1463_p0 = por %p1462_p13, %p1461_p12 }
 0x23b   : > { %p1457_p11 = pneg %p1456_p10 }
 0x23d   : > { %p1464_p1 = pnand %p1463_p0, %p1457_p11 }
 0x23f   : > { %1467 = shalt.err (!%p1464_p1)
}
 0x240   : > { %s1468_s30 = scalar_lea.hbm %s1778_s4, 512 }
 0x241   : > { %p1469_p2 = scmp.ne.s32.totalorder %s1778_s4, %s1468_s30  ;;  %p1474_p9 = scmp.lt.u32.totalorder %s1468_s30, %s1778_s4 }
 0x243   : > { %p1470_p5 = pnand %p1469_p2, %p1740_p6 }
 0x245   : > { %p1471_p7 = pneg %p1470_p5 }
 0x247   : > { %p1476_p3 = pnand %p1474_p9, %p1471_p7 }
 0x249   : > { %1479 = shalt.err (!%p1476_p3)
}
 0x24a   : > { %s1533_s8 = smov 128   ;;  %s1534_s9 = smov 8  }
 0x24b   : > { %1327 = dma.vmem_to_hbm [thread:$0]  (%p1740_p6), %s1032_s26, 512, %s1778_s4, [#allocation7], %s1533_s8, %s1533_s8, %s1534_s9  }
 0x24c PF: > { %p1341_p4 = scmp.ge.s32.totalorder %s1510_s17, 2  ;;  %p1342_p8 = scmp.eq.s32.totalorder %s1126_s19, 1 }
 0x24e   : > { %p1335_p10 = pnand %p1342_p8, %p1341_p4 }
 0x250   : > { %1497 = dma.done.wait (!%p1335_p10), [#allocation7], 512  }
 0x251   : > { %1499 = vsyncadd (!%p1335_p10), [#allocation7], 4294966784  ;;  %s18_s17 = sadd.s32 1, %s1510_s17   ;;  %s1788_s15 = smov %s1506_s16 }
 0x252   : > { %p15_p11 = scmp.ge.s32.totalorder %s18_s17, 4   ;;  %s1789_s16 = smov %s1791_s20 }
 0x254   :  { %17 = sbr.rel (!%p15_p11) target bundleno = 4 (0x4), region = 95 }
 0x25b   :  { %1052 = vsyncpa [#allocation6], 1 }
 0x25c   :  { %1054 = vsyncpa [#allocation6 + $0x1], 1 }
 0x25d   :  { %1055 = vsyncpa [#allocation7], 1 }
 0x25e   :  { %1057 = vsyncpa [#allocation7 + $0x1], 1 }

</bundles_post_ra>
